<compile_context>
chip_gen: v5e
topology: v5e:2x2
jax: 0.10.0
libtpu: 0.0.40
codegen_flags: <defaults>
</compile_context>

<pallas_src>
import jax
import jax.numpy as jnp
from jax.experimental import pallas as pl
from jax.experimental.pallas import tpu as pltpu


def _linear_probe_kernel(x_ref, w_ref, o_ref):
    # x_ref: (TB, H) streamed activation tile; w_ref: (1, H) resident weight row.
    x = x_ref[...]                     # streaming dtype (bf16 or f32)
    w = w_ref[...]                     # broadcasts over the TB rows
    prod = x * w                       # VPU; bf16 VALU on v6e/v7x
    # Cross-lane reduction on the XLU with f32 accumulation (no full-tile
    # f32 copy of x is forced up front).
    logits = jnp.sum(prod, axis=-1, keepdims=True, dtype=jnp.float32)  # (TB, 1)
    o_ref[...] = jax.nn.sigmoid(logits).astype(o_ref.dtype)


def _round_up(n, m):
    return ((n + m - 1) // m) * m


def _choose_batch_tile(batch, hidden, itemsize, per_buffer_budget=6 << 20):
    """Batch tile: sized by bytes (~6 MiB per buffer), multiple of 8 sublanes,
    and small enough that the grid has >= ~4 tiles (v7x megacore gets work)."""
    bytes_per_row = max(1, hidden * itemsize)
    rows = per_buffer_budget // bytes_per_row
    rows = max(8, (rows // 8) * 8)
    # Guarantee >= ~4 grid tiles when the batch permits, so the "parallel"
    # grid axis actually splits across both v7x TensorCores.
    rows_for_tiles = max(8, _round_up(pl.cdiv(batch, 4), 8))
    rows = min(rows, rows_for_tiles)
    rows = min(rows, _round_up(batch, 8))   # never larger than needed
    return rows


def linear_probe_forward(x, weight, *, compute_dtype=jnp.bfloat16):
    """sigmoid(x @ weight.T) with weight of shape (1, H) -- PyTorch LinearProbe.

    x: [B, H]; weight: [1, H] (nn.Linear(H, 1, bias=False).weight layout).
    Returns [B, 1] float32.

    compute_dtype: streaming dtype for x / weight (default bfloat16 -> halves
    HBM read bytes; the dot-product accumulation and sigmoid stay float32).
    Pass compute_dtype=None to stream inputs in their own dtype (recommended
    when x is only produced in f32 for this call, since the wrapper-side cast
    would otherwise add an extra HBM pass). Note: bf16 streaming rounds the
    inputs; outputs extremely close to the 0.5 decision boundary can shift
    slightly relative to an f32 reference.
    """
    if weight.ndim == 1:
        weight = weight.reshape(1, -1)
    B, H = x.shape
    assert weight.shape == (1, H)

    if compute_dtype is not None:
        cd = jnp.dtype(compute_dtype)
        if x.dtype != cd:
            x = x.astype(cd)
        if weight.dtype != cd:
            weight = weight.astype(cd)

    itemsize = jnp.dtype(x.dtype).itemsize
    TB = _choose_batch_tile(B, H, itemsize)
    num_tiles = pl.cdiv(B, TB)

    # Deeper pipelining on the only HBM-heavy operand when tiles are small:
    # hides DMA-issue latency / per-step overhead at one extra tile of VMEM.
    tile_bytes = TB * H * itemsize
    if tile_bytes <= (2 << 20) and num_tiles >= 3:
        x_spec = pl.BlockSpec((TB, H), lambda i: (i, 0),
                              pipeline_mode=pl.Buffered(3))
    else:
        x_spec = pl.BlockSpec((TB, H), lambda i: (i, 0))

    out = pl.pallas_call(
        _linear_probe_kernel,
        out_shape=jax.ShapeDtypeStruct((B, 1), jnp.float32),
        grid_spec=pl.GridSpec(
            grid=(num_tiles,),                       # cdiv grid: tail block masked by Pallas
            in_specs=[
                x_spec,                              # streamed activations
                pl.BlockSpec((1, H), lambda i: (0, 0)),  # resident weight row
            ],
            out_specs=pl.BlockSpec((TB, 1), lambda i: (i, 0)),
        ),
        compiler_params=pltpu.CompilerParams(
            dimension_semantics=("parallel",),       # independent batch tiles -> megacore
            # Enough for double/triple-buffered ~6 MiB tiles + f32 temps,
            # and comfortably under v7x's 64 MiB physical VMEM.
            vmem_limit_bytes=48 * 1024 * 1024,
        ),
    )(x, weight)

    return out


if __name__ == "__main__":
    hidden_size = 32
    batch = 8

    key = jax.random.PRNGKey(0)
    kx, kw = jax.random.split(key)
    x = jax.random.normal(kx, (batch, hidden_size), dtype=jnp.float32)
    # nn.Linear(hidden_size, 1, bias=False).weight has shape (1, hidden_size).
    weight = jax.random.normal(kw, (1, hidden_size), dtype=jnp.float32) * 0.1
    ref = jax.nn.sigmoid(x @ weight.T)

    # 1) Exact-precision path (stream f32): matches the PyTorch module closely.
    out = jax.block_until_ready(linear_probe_forward(x, weight, compute_dtype=jnp.float32))
    assert out.shape == (batch, 1)
    assert jnp.allclose(out, ref, atol=1e-5), "mismatch vs reference (f32 path)"

    # 2) Default bf16-streaming path (f32 accumulate + sigmoid): loose tolerance.
    out_bf = jax.block_until_ready(linear_probe_forward(x, weight))
    assert jnp.allclose(out_bf, ref, atol=2e-2), "mismatch vs reference (bf16 path)"

    # 3) Batch not a multiple of the tile / of 8: exercises the no-pad masked
    #    tail-block path (no wrapper-side jnp.pad anymore).
    kx2, kw2 = jax.random.split(jax.random.PRNGKey(0))
    x2 = jax.random.normal(kx2, (13, 128), dtype=jnp.float32)
    w2 = jax.random.normal(kw2, (1, 128), dtype=jnp.float32) * 0.05
    out2 = jax.block_until_ready(linear_probe_forward(x2, w2, compute_dtype=jnp.float32))
    ref2 = jax.nn.sigmoid(x2 @ w2.T)
    assert out2.shape == (13, 1)
    assert jnp.allclose(out2, ref2, atol=1e-5), "mismatch vs reference (tail block)"

    # 4) Multi-tile grid (>= 4 tiles, megacore split) + Buffered(3) small-tile
    #    path + bf16 default, with a non-divisible tail block.
    kx3, kw3 = jax.random.split(jax.random.PRNGKey(0))
    x3 = jax.random.normal(kx3, (523, 128), dtype=jnp.float32)
    w3 = jax.random.normal(kw3, (1, 128), dtype=jnp.float32) * 0.05
    out3 = jax.block_until_ready(linear_probe_forward(x3, w3))
    ref3 = jax.nn.sigmoid(x3 @ w3.T)
    assert out3.shape == (523, 1)
    assert jnp.allclose(out3, ref3, atol=2e-2), "mismatch vs reference (multi-tile)"

    print("KERNEL_OK")
</pallas_src>

<mosaic_0001>
module attributes {stable_mosaic.version = 11 : i64} {
  func.func @_linear_probe_kernel(%arg0: i32, %arg1: memref<8x32xf32, #tpu.memory_space<vmem>>, %arg2: memref<1x32xf32, #tpu.memory_space<vmem>>, %arg3: memref<8x1xf32, #tpu.memory_space<vmem>>) attributes {dimension_semantics = [#tpu.dimension_semantics<parallel>], iteration_bounds = array<i64: 1>, scalar_prefetch = 0 : i64, scratch_operands = 0 : i64, tpu.core_type = #tpu.core_type<tc>, window_params = [{transform_indices = @transform_0, window_bounds = array<i64: 8, 32>}, {pipeline_mode = #tpu.pipeline_mode<synchronous>, transform_indices = @transform_1, window_bounds = array<i64: 1, 32>}, {transform_indices = @transform_2, window_bounds = array<i64: 8, 1>}]} {
    %c0 = arith.constant 0 : index
    %c0_0 = arith.constant 0 : index
    %0 = vector.load %arg1[%c0, %c0_0] : memref<8x32xf32, #tpu.memory_space<vmem>>, vector<8x32xf32>
    %c0_1 = arith.constant 0 : index
    %c0_2 = arith.constant 0 : index
    %1 = vector.load %arg2[%c0_1, %c0_2] : memref<1x32xf32, #tpu.memory_space<vmem>>, vector<1x32xf32>
    %2 = vector.broadcast %1 : vector<1x32xf32> to vector<8x32xf32>
    %3 = arith.mulf %0, %2 : vector<8x32xf32>
    %cst = arith.constant dense<0.000000e+00> : vector<8xf32>
    %4 = vector.multi_reduction <add>, %3, %cst [1] : vector<8x32xf32> to vector<8xf32>
    %5 = vector.shape_cast %4 : vector<8xf32> to vector<8x1xf32>
    %6 = arith.negf %5 : vector<8x1xf32>
    %7 = math.exp %6 : vector<8x1xf32>
    %cst_3 = arith.constant 1.000000e+00 : f32
    %8 = vector.broadcast %cst_3 : f32 to vector<8x1xf32>
    %9 = arith.addf %8, %7 : vector<8x1xf32>
    %10 = arith.divf %8, %9 : vector<8x1xf32>
    %c0_4 = arith.constant 0 : index
    %c0_5 = arith.constant 0 : index
    %11 = vector.load %arg3[%c0_4, %c0_5] : memref<8x1xf32, #tpu.memory_space<vmem>>, vector<8x1xf32>
    tpu.vector_store %arg3[%c0_4, %c0_5], %10 {strides = array<i32>} : memref<8x1xf32, #tpu.memory_space<vmem>>, vector<8x1xf32>,
    return
  }
  func.func @transform_0(%arg0: i32) -> (i32, i32) {
    %c0_i32 = arith.constant 0 : i32
    %c0_i32_0 = arith.constant 0 : i32
    return %arg0, %c0_i32 : i32, i32
  }
  func.func @transform_1(%arg0: i32) -> (i32, i32) {
    %c0_i32 = arith.constant 0 : i32
    %c0_i32_0 = arith.constant 0 : i32
    %c0_i32_1 = arith.constant 0 : i32
    return %c0_i32, %c0_i32_0 : i32, i32
  }
  func.func @transform_2(%arg0: i32) -> (i32, i32) {
    %c0_i32 = arith.constant 0 : i32
    %c0_i32_0 = arith.constant 0 : i32
    return %arg0, %c0_i32 : i32, i32
  }
}

</mosaic_0001>

<bundles_post_ra>
// kernel: tpu_custom_call.1
= control target key start
LH: loop header
LB: loop body
LE: loop exit
PB: predicated region body
PF: predicated region fallthrough
CT: control target
= control target key end

     0   :  { %7 = vsyncpa [#allocation3], 0  ;;  %s162_s0 = inlined_call_operand.hbm [shape: f32[8,32], index: 0, kind: input, shape index: {}]   ;;  %s163_s1 = inlined_call_operand.hbm [shape: f32[1,32], index: 1, kind: input, shape index: {}]   ;;  %s164_s2 = inlined_call_operand.vmem [shape: f32[8,1], index: 2, kind: output, shape index: {}]  }
   0x1   :  { %s14_s11 = sshll.u32 %s162_s0, 4  ;;  %s15_s11 = int_to_ptr.hbm [resolvable:$true] %s14_s11 }
   0x2   :  { %8 = vsyncpa [#allocation5], 0  ;;  %s136_s12 = smov [#allocation2]   ;;  %s25_s16 = sshll.u32 %s163_s1, 4  ;;  %s26_s16 = int_to_ptr.hbm [resolvable:$true] %s25_s16 }
   0x3   :  { %s16_s13 = sshll.u32 %s136_s12, 4  ;;  %s137_s17 = smov [#allocation4]   ;;  %s17_s13 = int_to_ptr.vmem [resolvable:$true] %s16_s13 }
   0x4   :  { %19 = dma.hbm_to_vmem [thread:$0]  %s15_s11, 128, %s17_s13, [#allocation3]  }
   0x5   :  { %s27_s18 = sshll.u32 %s137_s17, 4  ;;  %s28_s18 = int_to_ptr.vmem [resolvable:$true] %s27_s18 }
   0x6   :  { %30 = dma.hbm_to_vmem [thread:$0]  %s26_s16, 16, %s28_s18, [#allocation5]  }
   0x7   :  { %132 = dma.done.wait [#allocation3], 128  }
   0x8   :  { %133 = vsyncadd [#allocation3], 4294967168 }
   0x9   :  { %134 = dma.done.wait [#allocation5], 16  }
   0xa   :  { %135 = vsyncadd [#allocation5], 4294967280  ;;  %v39_v0 = vld [vmem:[#allocation2] sm:$0xff]  ;;  %v79_v1 = vld [vmem:[#allocation4] ss:$0 sm:$0xff]  ;;  %vm45_vm0 = vcmask 261120  }
   0xb   :  { %v44_v2 = vmul.f32 %v79_v1, %v39_v0  ;;  %vm68_vm4 = vcmask 7168  }
   0xd   :  { %v46_v3 = vsel %vm45_vm0, %v44_v2, 0.0 }
   0xe   :  { %47 = vadd.xlane.f32.xlu0 %v46_v3 }
  0x81   :  { %v48_v4 = vpop.xlane.xlu0 %47 }
  0x82   :  { %v76_v5 = vmul.f32 -1.442695, %v48_v4 }
  0x84   :  { %80 = vpow2.f32 %v76_v5 }
  0x8a   :  { %v81_v6 = vpop.eup %80 }
  0x8b   :  { %v52_v7 = vadd.f32 1.0, %v81_v6 }
  0x8d   :  { %82 = vrcp.f32 %v52_v7  ;;  %v64_v11 = vand.u32 2147483648, %v52_v7  ;;  %v62_v13 = vand.u32 2147483647, %v52_v7  ;;  %vm58_vm2 = vweird.f32 %v52_v7 }
  0x8f   :  { %v65_v15 = vor.u32 1.1754944e-38, %v64_v11  ;;  %vm63_vm5 = vcmp.eq.f32.partialorder %v62_v13, 8.507059e+37 }
  0x93   :  { %v83_v8 = vpop.eup %82 }
  0x94   :  { %v54_v9 = vmul.f32 %v83_v8, %v52_v7  ;;  %vm59_vm1 = vweird.f32 %v83_v8 }
  0x95   :  { %vm60_vm3 = vmor %vm58_vm2, %vm59_vm1 }
  0x96   :  { %v55_v10 = vsub.f32 1.0, %v54_v9 }
  0x98   :  { %v56_v12 = vmul.f32 %v83_v8, %v55_v10 }
  0x9a   :  { %v57_v14 = vadd.f32 %v83_v8, %v56_v12 }
  0x9c   :  { %v61_v16 = vsel %vm60_vm3, %v83_v8, %v57_v14 }
  0x9d   :  { %v66_v17 = vsel %vm63_vm5, %v65_v15, %v61_v16 }
  0x9e   :  { %69 = vst.msk [vmem:[%s164_s2] sm:$0xff] %vm68_vm4, %v66_v17 }
  0x9f   :  { %74 = vsyncpa [#allocation3], 1 }
  0xa0   :  { %75 = vsyncpa [#allocation5], 1 }

</bundles_post_ra>
